<compile_context>
chip_gen: v7x
topology: tpu7x:2x2x1
jax: 0.10.0
libtpu: 0.0.40
codegen_flags: <defaults>
</compile_context>

<pallas_src>
import jax
import jax.numpy as jnp
from jax.experimental import pallas as pl
from jax.experimental.pallas import tpu as pltpu

LN_EPS = 1e-5  # nn.LayerNorm default


# ---------------------------------------------------------------------------
# Hardware / tiling helpers
# ---------------------------------------------------------------------------
def _vmem_capacity_bytes():
    try:
        info = pltpu.get_tpu_info()
        cap = getattr(info, "vmem_capacity_bytes", None)
        if cap:
            return int(cap)
    except Exception:
        pass
    return 64 << 20  # conservative default (v7x per-TC VMEM)


def _cdiv(a, b):
    return (a + b - 1) // b


def _row_granularity(*dtypes):
    g = 8
    for dt in dtypes:
        isz = jnp.dtype(dt).itemsize
        if isz == 2:
            g = max(g, 16)
        elif isz == 1:
            g = max(g, 32)
    return g


def _vmem_bytes(tile_rows, D, tn, n_tiles, in_isz, has_res, out_isz, res_isz, w_isz):
    """Honest working-set estimate: pipelined I/O blocks, params, scratch and
    in-kernel f32 temporaries (res, centered, matmul accumulator)."""
    row = tile_rows
    io = 2 * row * D * in_isz * (2 if has_res else 1)          # input blocks (x2 buf)
    io += 2 * row * tn * out_isz + 2 * row * D * res_isz       # output blocks (x2 buf)
    w_bufs = 1 if n_tiles == 1 else 2
    params = w_bufs * D * tn * w_isz + 2 * tn * 4              # weight + bias blocks
    scratch = row * D * w_isz                                  # normed scratch
    temps = 3 * row * D * 4 + row * tn * 4                     # f32 temporaries + acc
    return io + params + scratch + temps


def _choose_tn(D, w_itemsize, budget):
    """Tile the output/weight column axis only when the full (D, D) weight is
    too big to keep comfortably resident in VMEM."""
    full = D * D * w_itemsize
    target = min(budget // 4, 8 << 20)
    if full <= target or D <= 256:
        return D, 1
    tn = max(128, (target // (D * w_itemsize)) // 128 * 128)
    tn = min(tn, D)
    return tn, _cdiv(D, tn)


def _choose_tile_rows(M, D, tn, n_tiles, in_dtype, has_res, out_dtype, res_dtype,
                      w_dtype, budget):
    gran = _row_granularity(in_dtype, out_dtype, res_dtype)
    in_isz = jnp.dtype(in_dtype).itemsize
    out_isz = jnp.dtype(out_dtype).itemsize
    res_isz = jnp.dtype(res_dtype).itemsize
    w_isz = jnp.dtype(w_dtype).itemsize

    tile = 1024
    # 1) Fit the VMEM budget (double buffers + scratch + f32 temporaries).
    while tile > gran and _vmem_bytes(tile, D, tn, n_tiles, in_isz, has_res,
                                      out_isz, res_isz, w_isz) > budget:
        tile //= 2
    # 2) Guarantee pipeline depth / megacore balance: at least 4 grid steps.
    while tile > gran and _cdiv(M, tile) < 4:
        tile //= 2
    # 3) Avoid a nearly-empty last tile, but don't go below 128 rows for it
    #    (tiles >= ~128-256 rows are needed to approach the HBM roofline).
    while tile > max(gran, 128):
        rem = M % tile
        if rem == 0 or 2 * rem >= tile:
            break
        tile //= 2
    return max(tile, gran)


def _const_spec(shape, index_map):
    """Constant-index parameter block (same tile every grid step): single-buffer."""
    if hasattr(pl, "Buffered"):
        try:
            return pl.BlockSpec(shape, index_map, pipeline_mode=pl.Buffered(1))
        except TypeError:  # BlockSpec without pipeline_mode keyword
            pass
    return pl.BlockSpec(shape, index_map)


# ---------------------------------------------------------------------------
# Kernel
# ---------------------------------------------------------------------------
def _make_kernel(has_res):
    def kernel(*refs):
        if has_res:
            h_ref, r_ref, w_ref, b_ref, hs_out_ref, res_out_ref, normed_ref = refs
        else:
            h_ref, w_ref, b_ref, hs_out_ref, res_out_ref, normed_ref = refs
            r_ref = None

        # The add + LayerNorm only depend on the row tile; do them once per row
        # tile (n == 0) and keep the normalized activations in a VMEM scratch.
        @pl.when(pl.program_id(1) == 0)
        def _():
            res = h_ref[...].astype(jnp.float32)
            if r_ref is not None:
                res = res + r_ref[...].astype(jnp.float32)
            # Early residual store: the f32 writeback DMA overlaps the matmul.
            res_out_ref[...] = res.astype(res_out_ref.dtype)
            # One-pass LN stats; the affine (gamma/beta) is folded into W/b.
            mean = jnp.mean(res, axis=-1, keepdims=True)
            mean_sq = jnp.mean(res * res, axis=-1, keepdims=True)
            var = mean_sq - mean * mean
            inv = jax.lax.rsqrt(var + LN_EPS)
            normed_ref[...] = ((res - mean) * inv).astype(normed_ref.dtype)

        # MXU matmul: low-precision inputs, f32 accumulation.
        out = jnp.dot(normed_ref[...], w_ref[...],
                      preferred_element_type=jnp.float32)
        out = out + b_ref[...].astype(jnp.float32)
        hs_out_ref[...] = out.astype(hs_out_ref.dtype)

    return kernel


# ---------------------------------------------------------------------------
# Parameter preparation (hoist out of the per-call path where possible)
# ---------------------------------------------------------------------------
def prepare_block_params(ln_weight, ln_bias, mixer_w, mixer_b,
                         matmul_dtype=jnp.bfloat16):
    """Fold the LayerNorm affine into the mixer weight/bias:
         W' = diag(gamma) @ W   (bf16 for the MXU)
         b' = beta @ W + b      (f32)
    Call once per layer and pass the result to block_forward."""
    w32 = mixer_w.astype(jnp.float32)
    w_folded = (ln_weight.astype(jnp.float32)[:, None] * w32).astype(matmul_dtype)
    b_folded = (ln_bias.astype(jnp.float32) @ w32 + mixer_b.astype(jnp.float32))
    return w_folded, b_folded.reshape(1, -1).astype(jnp.float32)


# ---------------------------------------------------------------------------
# Forward wrapper
# ---------------------------------------------------------------------------
def block_forward(hidden_states, residual, ln_weight, ln_bias, mixer_w, mixer_b,
                  *, tile_rows=None, matmul_dtype=jnp.bfloat16,
                  residual_in_fp32=True, hidden_out_dtype=None,
                  prepared_params=None):
    """Fused Add -> LayerNorm -> Linear-mixer.  hidden_states: (B, L, D)."""
    B, L, D = hidden_states.shape
    M = B * L
    has_res = residual is not None

    out_dtype = jnp.dtype(hidden_out_dtype if hidden_out_dtype is not None
                          else hidden_states.dtype)
    if residual_in_fp32:
        res_dtype = jnp.dtype(jnp.float32)
    else:
        res_dtype = jnp.promote_types(
            hidden_states.dtype,
            residual.dtype if has_res else hidden_states.dtype)

    if prepared_params is None:
        prepared_params = prepare_block_params(ln_weight, ln_bias, mixer_w,
                                               mixer_b, matmul_dtype)
    w_folded, b_folded = prepared_params
    w_isz = jnp.dtype(w_folded.dtype).itemsize

    cap = _vmem_capacity_bytes()
    budget = int(cap * 0.6)  # per-generation: ~38 MiB on v7x, ~76 MiB on v5e/v6e

    tn, n_tiles = _choose_tn(D, w_isz, budget)
    if tile_rows is None:
        tile_rows = _choose_tile_rows(M, D, tn, n_tiles, hidden_states.dtype,
                                      has_res, out_dtype, res_dtype,
                                      w_folded.dtype, budget)

    grid = (_cdiv(M, tile_rows), n_tiles)   # ragged last row/col blocks are fine

    h2 = hidden_states.reshape(M, D)
    args = [h2]
    in_specs = [pl.BlockSpec((tile_rows, D), lambda i, n: (i, 0))]
    if has_res:
        args.append(residual.reshape(M, D))
        in_specs.append(pl.BlockSpec((tile_rows, D), lambda i, n: (i, 0)))

    w_map = lambda i, n: (0, n)
    b_map = lambda i, n: (0, n)
    if n_tiles == 1:
        in_specs += [_const_spec((D, tn), w_map), _const_spec((1, tn), b_map)]
    else:
        in_specs += [pl.BlockSpec((D, tn), w_map), pl.BlockSpec((1, tn), b_map)]
    args += [w_folded, b_folded]

    out_specs = [pl.BlockSpec((tile_rows, tn), lambda i, n: (i, n)),
                 pl.BlockSpec((tile_rows, D), lambda i, n: (i, 0))]

    vmem_est = _vmem_bytes(tile_rows, D, tn, n_tiles,
                           jnp.dtype(hidden_states.dtype).itemsize, has_res,
                           out_dtype.itemsize, jnp.dtype(res_dtype).itemsize,
                           w_isz)
    vmem_limit = int(min(max(vmem_est + (8 << 20), 32 << 20), cap - (4 << 20)))

    kernel = _make_kernel(has_res)

    hs_out, res_out = pl.pallas_call(
        kernel,
        out_shape=(
            jax.ShapeDtypeStruct((M, D), out_dtype),
            jax.ShapeDtypeStruct((M, D), res_dtype),
        ),
        grid_spec=pltpu.PrefetchScalarGridSpec(
            num_scalar_prefetch=0,
            grid=grid,
            in_specs=in_specs,
            out_specs=out_specs,
            scratch_shapes=[pltpu.VMEM((tile_rows, D), w_folded.dtype)],
        ),
        compiler_params=pltpu.CompilerParams(
            dimension_semantics=("parallel", "arbitrary"),
            vmem_limit_bytes=vmem_limit,
        ),
    )(*args)

    return hs_out.reshape(B, L, D), res_out.reshape(B, L, D)


# ---------------------------------------------------------------------------
# Pure-JAX reference (f32 LayerNorm + f32 matmul; kernel uses bf16 MXU inputs)
# ---------------------------------------------------------------------------
def _reference(hidden_states, residual, ln_weight, ln_bias, mixer_w, mixer_b):
    h = hidden_states.astype(jnp.float32)
    res = h if residual is None else residual.astype(jnp.float32) + h
    mean = jnp.mean(res, axis=-1, keepdims=True)
    var = jnp.mean((res - mean) ** 2, axis=-1, keepdims=True)
    normed = (res - mean) * jax.lax.rsqrt(var + LN_EPS) * ln_weight + ln_bias
    out = normed @ mixer_w.astype(jnp.float32) + mixer_b.astype(jnp.float32)
    return out.astype(hidden_states.dtype), res


if __name__ == "__main__":
    root = jax.random.PRNGKey(0)

    def _check(B, L, D, with_residual, case_id):
        k1, k2, k3, k4, k5, k6 = jax.random.split(jax.random.fold_in(root, case_id), 6)
        hidden_states = jax.random.normal(k1, (B, L, D), dtype=jnp.float32)
        residual = (jax.random.normal(k2, (B, L, D), dtype=jnp.float32)
                    if with_residual else None)
        ln_weight = 1.0 + 0.1 * jax.random.normal(k3, (D,), dtype=jnp.float32)
        ln_bias = 0.05 * jax.random.normal(k4, (D,), dtype=jnp.float32)
        mixer_w = jax.random.normal(k5, (D, D), dtype=jnp.float32) * 0.02
        mixer_b = jax.random.normal(k6, (D,), dtype=jnp.float32) * 0.01

        # Fold the LN affine / cast the weight once (hoisted out of the call path).
        prepared = prepare_block_params(ln_weight, ln_bias, mixer_w, mixer_b)

        hs_out, res_out = block_forward(hidden_states, residual,
                                        ln_weight, ln_bias, mixer_w, mixer_b,
                                        prepared_params=prepared)
        jax.block_until_ready((hs_out, res_out))

        hs_ref, res_ref = _reference(hidden_states, residual,
                                     ln_weight, ln_bias, mixer_w, mixer_b)
        assert hs_out.shape == (B, L, D) and res_out.shape == (B, L, D)
        err = float(jnp.max(jnp.abs(hs_out.astype(jnp.float32)
                                    - hs_ref.astype(jnp.float32))))
        assert jnp.allclose(hs_out, hs_ref, atol=2e-2, rtol=2e-2), err
        assert jnp.allclose(res_out, res_ref, atol=1e-5, rtol=1e-5)

    # Small shapes consistent with the module (batch=2, seq=8, hidden=32).
    _check(2, 8, 32, True, 0)      # residual provided
    _check(2, 8, 32, False, 1)     # first block: residual is None
    # Larger ragged shape: M=520 rows -> tile 128, 5-step grid with ragged last block.
    _check(2, 260, 192, True, 2)

    print("KERNEL_OK")
</pallas_src>

<mosaic_0001>
module attributes {stable_mosaic.version = 11 : i64} {
  func.func @kernel(%arg0: i32, %arg1: i32, %arg2: memref<8x32xf32, #tpu.memory_space<vmem>>, %arg3: memref<8x32xf32, #tpu.memory_space<vmem>>, %arg4: memref<32x32xbf16, #tpu.memory_space<vmem>>, %arg5: memref<1x32xf32, #tpu.memory_space<vmem>>, %arg6: memref<8x32xf32, #tpu.memory_space<vmem>>, %arg7: memref<8x32xf32, #tpu.memory_space<vmem>>, %arg8: memref<8x32xbf16, #tpu.memory_space<vmem>>) attributes {dimension_semantics = [#tpu.dimension_semantics<parallel>, #tpu.dimension_semantics<arbitrary>], iteration_bounds = array<i64: 2, 1>, scalar_prefetch = 0 : i64, scratch_operands = 1 : i64, tpu.core_type = #tpu.core_type<tc>, window_params = [{transform_indices = @transform_0, window_bounds = array<i64: 8, 32>}, {transform_indices = @transform_1, window_bounds = array<i64: 8, 32>}, {pipeline_mode = #tpu.pipeline_mode<synchronous>, transform_indices = @transform_2, window_bounds = array<i64: 32, 32>}, {pipeline_mode = #tpu.pipeline_mode<synchronous>, transform_indices = @transform_3, window_bounds = array<i64: 1, 32>}, {transform_indices = @transform_4, window_bounds = array<i64: 8, 32>}, {transform_indices = @transform_5, window_bounds = array<i64: 8, 32>}]} {
    %c0_i32 = arith.constant 0 : i32
    %0 = arith.cmpi eq, %arg1, %c0_i32 : i32
    %1 = arith.extui %0 : i1 to i32
    %c0_i32_0 = arith.constant 0 : i32
    %2 = arith.cmpi ne, %1, %c0_i32_0 : i32
    scf.if %2 {
      %c0_8 = arith.constant 0 : index
      %c0_9 = arith.constant 0 : index
      %10 = vector.load %arg2[%c0_8, %c0_9] : memref<8x32xf32, #tpu.memory_space<vmem>>, vector<8x32xf32>
      %c0_10 = arith.constant 0 : index
      %c0_11 = arith.constant 0 : index
      %11 = vector.load %arg3[%c0_10, %c0_11] : memref<8x32xf32, #tpu.memory_space<vmem>>, vector<8x32xf32>
      %12 = arith.addf %10, %11 : vector<8x32xf32>
      %c0_12 = arith.constant 0 : index
      %c0_13 = arith.constant 0 : index
      %13 = vector.load %arg7[%c0_12, %c0_13] : memref<8x32xf32, #tpu.memory_space<vmem>>, vector<8x32xf32>
      tpu.vector_store %arg7[%c0_12, %c0_13], %12 {strides = array<i32>} : memref<8x32xf32, #tpu.memory_space<vmem>>, vector<8x32xf32>,
      %cst_14 = arith.constant dense<0.000000e+00> : vector<8xf32>
      %14 = vector.multi_reduction <add>, %12, %cst_14 [1] : vector<8x32xf32> to vector<8xf32>
      %15 = vector.shape_cast %14 : vector<8xf32> to vector<8x1xf32>
      %cst_15 = arith.constant 3.200000e+01 : f32
      %16 = vector.broadcast %cst_15 : f32 to vector<8x1xf32>
      %17 = arith.divf %15, %16 : vector<8x1xf32>
      %18 = arith.mulf %12, %12 : vector<8x32xf32>
      %cst_16 = arith.constant dense<0.000000e+00> : vector<8xf32>
      %19 = vector.multi_reduction <add>, %18, %cst_16 [1] : vector<8x32xf32> to vector<8xf32>
      %20 = vector.shape_cast %19 : vector<8xf32> to vector<8x1xf32>
      %cst_17 = arith.constant 3.200000e+01 : f32
      %21 = vector.broadcast %cst_17 : f32 to vector<8x1xf32>
      %22 = arith.divf %20, %21 : vector<8x1xf32>
      %23 = arith.mulf %17, %17 : vector<8x1xf32>
      %24 = arith.subf %22, %23 : vector<8x1xf32>
      %cst_18 = arith.constant 9.99999974E-6 : f32
      %25 = vector.broadcast %cst_18 : f32 to vector<8x1xf32>
      %26 = arith.addf %24, %25 : vector<8x1xf32>
      %27 = math.rsqrt %26 : vector<8x1xf32>
      %28 = vector.broadcast %17 : vector<8x1xf32> to vector<8x32xf32>
      %29 = arith.subf %12, %28 : vector<8x32xf32>
      %30 = vector.broadcast %27 : vector<8x1xf32> to vector<8x32xf32>
      %31 = arith.mulf %29, %30 : vector<8x32xf32>
      %32 = arith.truncf %31 : vector<8x32xf32> to vector<8x32xbf16>
      %c0_19 = arith.constant 0 : index
      %c0_20 = arith.constant 0 : index
      %33 = vector.load %arg8[%c0_19, %c0_20] : memref<8x32xbf16, #tpu.memory_space<vmem>>, vector<8x32xbf16>
      tpu.vector_store %arg8[%c0_19, %c0_20], %32 {strides = array<i32>} : memref<8x32xbf16, #tpu.memory_space<vmem>>, vector<8x32xbf16>,
    } else {
    }
    %c0 = arith.constant 0 : index
    %c0_1 = arith.constant 0 : index
    %3 = vector.load %arg8[%c0, %c0_1] : memref<8x32xbf16, #tpu.memory_space<vmem>>, vector<8x32xbf16>
    %c0_2 = arith.constant 0 : index
    %c0_3 = arith.constant 0 : index
    %4 = vector.load %arg4[%c0_2, %c0_3] : memref<32x32xbf16, #tpu.memory_space<vmem>>, vector<32x32xbf16>
    %cst = arith.constant dense<0.000000e+00> : vector<8x32xf32>
    %5 = tpu.matmul %3, %4, %cst {dimension_numbers = #tpu.dot_dimension_numbers<[1], [0], [0], [1], [0, 0, 1, 1], [], []>} : vector<8x32xbf16>, vector<32x32xbf16>, vector<8x32xf32> -> vector<8x32xf32>
    %c0_4 = arith.constant 0 : index
    %c0_5 = arith.constant 0 : index
    %6 = vector.load %arg5[%c0_4, %c0_5] : memref<1x32xf32, #tpu.memory_space<vmem>>, vector<1x32xf32>
    %7 = vector.broadcast %6 : vector<1x32xf32> to vector<8x32xf32>
    %8 = arith.addf %5, %7 : vector<8x32xf32>
    %c0_6 = arith.constant 0 : index
    %c0_7 = arith.constant 0 : index
    %9 = vector.load %arg6[%c0_6, %c0_7] : memref<8x32xf32, #tpu.memory_space<vmem>>, vector<8x32xf32>
    tpu.vector_store %arg6[%c0_6, %c0_7], %8 {strides = array<i32>} : memref<8x32xf32, #tpu.memory_space<vmem>>, vector<8x32xf32>,
    return
  }
  func.func @transform_0(%arg0: i32, %arg1: i32) -> (i32, i32) {
    %c0_i32 = arith.constant 0 : i32
    %c0_i32_0 = arith.constant 0 : i32
    return %arg0, %c0_i32 : i32, i32
  }
  func.func @transform_1(%arg0: i32, %arg1: i32) -> (i32, i32) {
    %c0_i32 = arith.constant 0 : i32
    %c0_i32_0 = arith.constant 0 : i32
    return %arg0, %c0_i32 : i32, i32
  }
  func.func @transform_2(%arg0: i32, %arg1: i32) -> (i32, i32) {
    %c0_i32 = arith.constant 0 : i32
    %c0_i32_0 = arith.constant 0 : i32
    return %c0_i32, %arg1 : i32, i32
  }
  func.func @transform_3(%arg0: i32, %arg1: i32) -> (i32, i32) {
    %c0_i32 = arith.constant 0 : i32
    %c0_i32_0 = arith.constant 0 : i32
    return %c0_i32, %arg1 : i32, i32
  }
  func.func @transform_4(%arg0: i32, %arg1: i32) -> (i32, i32) {
    %c0_i32 = arith.constant 0 : i32
    return %arg0, %arg1 : i32, i32
  }
  func.func @transform_5(%arg0: i32, %arg1: i32) -> (i32, i32) {
    %c0_i32 = arith.constant 0 : i32
    %c0_i32_0 = arith.constant 0 : i32
    return %arg0, %c0_i32 : i32, i32
  }
}

</mosaic_0001>

<bundles_post_ra>
// kernel: tpu_custom_call.1
= control target key start
LH: loop header
LB: loop body
LE: loop exit
PB: predicated region body
PF: predicated region fallthrough
CT: control target
= control target key end

     0   :  { %s1291_s0 = inlined_call_operand.hbm [shape: f32[16,32], index: 0, kind: input, shape index: {}]   ;;  %s1292_s1 = inlined_call_operand.hbm [shape: f32[16,32], index: 1, kind: input, shape index: {}]   ;;  %s1293_s2 = inlined_call_operand.hbm [shape: bf16[32,32], index: 2, kind: input, shape index: {}]   ;;  %s1294_s3 = inlined_call_operand.vmem [shape: f32[1,32], index: 3, kind: input, shape index: {}]   ;;  %s1295_s4 = inlined_call_operand.hbm [shape: f32[16,32], index: 4, kind: output, shape index: {0}]   ;;  %s1296_s5 = inlined_call_operand.hbm [shape: f32[16,32], index: 5, kind: output, shape index: {1}]  }
   0x1   :  { %1303 = sst [smem:[#allocation20_spill]] %s1293_s2 }
   0x2   :  { %11 = vsyncpa [#allocation4], 0 }
   0x3   :  { %13 = vsyncpa [#allocation4 + $0x1], 0 }
   0x4   :  { %14 = vsyncpa [#allocation7], 0 }
   0x5   :  { %16 = vsyncpa [#allocation7 + $0x1], 0 }
   0x6   :  { %17 = vsyncpa [#allocation5], 0 }
   0x7   :  { %19 = vsyncpa [#allocation5 + $0x1], 0 }
   0x8   :  { %20 = vsyncpa [#allocation11], 0 }
   0x9   :  { %22 = vsyncpa [#allocation11 + $0x1], 0  ;;  %s1004_s18 = smov 0   ;;  %s1006_s19 = smov 0  }
   0xa   :  { %s1008_s20 = smov 0   ;;  %s1010_s21 = smov 0  }
   0xb   :  { %s1012_s22 = smov 0   ;;  %s1014_s23 = smov 0  }
   0xc LB: > { %1304 = sst [smem:[#allocation17_spill]] %s959_s22  ;;  %s1035_s24 = sadd.s32 4294967295, %s963_s23   ;;  %s963_s23 = sphi %s1014_s23, %s28_s23   ;;  %s959_s22 = sphi %s1012_s22, %s1325_s22   ;;  %s955_s21 = sphi %s1010_s21, %s1324_s21   ;;  %s951_s20 = sphi %s1008_s20, %s1328_s20   ;;  %s947_s19 = sphi %s1006_s19, %s1327_s19   ;;  %s943_s18 = sphi %s1004_s18, %s1326_s18  }
   0xd   : > { %s626_s25 = sadd.s32 4294967294, %s963_s23   ;;  %p60_p0 = scmp.ne.s32.totalorder %s947_s19, %s943_s18 }
   0xe   : > { %p1297_p1 = scmp.eq.s32.totalorder %s1035_s24, 0  ;;  %p170_p3 = scmp.eq.s32.totalorder %s626_s25, 1 }
   0xf   : > { %p627_p5 = scmp.ge.s32.totalorder %s963_s23, 1  ;;  %p203_p7 = scmp.lt.s32.totalorder %s963_s23, 3 }
  0x10   : > { %p1044_p4 = por %p1297_p1, %p60_p0  ;;  %p1049_p6 = por %p170_p3, %p60_p0 }
  0x11   : > { %p1054_p8 = pnand %p627_p5, %p203_p7  ;;  %s965_s29 = smov [#allocation8]  }
  0x12   : > { %s1305_s26 = scalar_select %p1044_p4, 1, 0 }
  0x13   : > { %s1306_s27 = scalar_select %p1049_p6, 1, 0 }
  0x14   : > { %s1307_s28 = scalar_select %p1054_p8, 1, 0 }
  0x15   : > { %s217_s30 = sshll.u32 %s965_s29, 4  ;;  %p674_p9 = pneg %p1054_p8  ;;  %s218_s30 = int_to_ptr.vmem [resolvable:$true] %s217_s30 }
  0x16   : > { %s40_s7 = sadd.s32 1, %s959_s22  ;;  %s1309_s2 = sld [smem:[#allocation20_spill]] }
  0x17   : > { %p1063_p11 = pnand %p674_p9, %p1297_p1 }
  0x19   : > { %p755_p13 = pneg %p1063_p11 }
  0x1c   : > { %s753_s10 = scalar_lea.hbm %s1309_s2, 256 }
  0x1d   : > { %p754_p12 = scmp.ne.s32.totalorder %s1309_s2, %s753_s10  ;;  %p760_p5 = scmp.lt.u32.totalorder %s753_s10, %s1309_s2 }
  0x1f   : > { %p756_p0 = pnand %p755_p13, %p754_p12 }
  0x21   : > { %p757_p3 = pneg %p756_p0 }
  0x23   : > { %p762_p7 = pnand %p760_p5, %p757_p3 }
  0x25   : > { %765 = shalt.err (!%p762_p7)
}
  0x26   : > { %s766_s15 = scalar_lea.vmem %s218_s30, 256  ;;  %p774_p2 = scmp.lt.s32.totalorder %s218_s30, %s218_s30 }
  0x27   : > { %p767_p9 = scmp.ne.s32.totalorder %s218_s30, %s766_s15  ;;  %p775_p6 = scmp.lt.s32.totalorder %s766_s15, %s766_s15 }
  0x29   : > { %p769_p10 = pnand %p767_p9, %p755_p13  ;;  %p776_p4 = por %p775_p6, %p774_p2 }
  0x2b   : > { %p770_p1 = pneg %p769_p10 }
  0x2d   : > { %p777_p8 = pnand %p776_p4, %p770_p1 }
  0x2f   : > { %780 = shalt.err (!%p777_p8)
}
  0x30   : > { %s966_s16 = smov 64   ;;  %s967_s17 = smov 4  }
  0x31   : > { %677 = dma.hbm_to_vmem [thread:$0]  (!%p1063_p11), %s1309_s2, 256, %s218_s30, [#allocation7], %s966_s16, %s966_s16, %s967_s17  }
  0x32   : > { %p42_p1 = scmp.ge.s32.totalorder %s40_s7, 2  ;;  %s47_s8 = sadd.s32 1, %s951_s20 }
  0x33   : > { %p54_p2 = scmp.ne.s32.totalorder %s951_s20, %s947_s19  ;;  %p55_p4 = scmp.eq.s32.totalorder %s963_s23, 0 }
  0x34   : > { %s1330_s7 = smov (%p42_p1, %s40_s7), 0  ;;  %p1312_p8 = scmp.eq.s32.totalorder %s1035_s24, 1 }
  0x35   : > { %1310 = sst [smem:[#allocation18_spill]] %s1330_s7  ;;  %p1090_p6 = por %p55_p4, %p54_p2 }
  0x36   : > { %p1096_p10 = por %p1312_p8, %p54_p2  ;;  %s44_s10 = ssub.s32 %s959_s22, %s1330_s7 }
  0x37   : > { %p693_p11 = scmp.lt.s32.totalorder %s963_s23, 2  ;;  %p45_p12 = scmp.eq.s32.totalorder %s44_s10, 0 }
  0x38   : > { %s1313_s6 = scalar_select %p1096_p10, 1, 0 }
  0x39   : > { %s237_s30 = sand.u32 1, %s951_s20   ;;  %s632_s13 = sshll.u32 %s959_s22, 7 }
  0x3a   : > { %s1104_s11 = sshll.u32 %s237_s30, 3  ;;  %s1113_s16 = scalar_lea.hbm %s1291_s0, %s632_s13 }
  0x3b   : > { %s1107_s12 = scalar_select %p45_p12, %s951_s20, %s47_s8  }
  0x3c   : > { %s241_s17 = scalar_lea.vmem [#allocation3], %s1104_s11  ;;  %p1120_p13 = pnand %p693_p11, %p1090_p6 }
  0x3d   : > { %1314 = sst [smem:[#allocation19_spill]] %s1107_s12  ;;  %s248_s25 = sshll.u32 %s241_s17, 4  ;;  %s1116_s25 = int_to_ptr.vmem [resolvable:$true] %s248_s25 }
  0x3e   : > { %s1127_s14 = scalar_lea.hbm %s1292_s1, %s632_s13  ;;  %s255_s15 = sand.u32 1, %s963_s23  }
  0x3f   : > { %s238_s2 = scalar_lea.sflag [#allocation4], %s237_s30  ;;  %s781_s7 = scalar_lea.hbm %s1113_s16, 128 }
  0x40   : > { %p782_p0 = scmp.ne.s32.totalorder %s1113_s16, %s781_s7  ;;  %p783_p3 = pneg %p1120_p13 }
  0x41   : > { %s786_s22 = scalar_lea.hbm %s1291_s0, 256  ;;  %p787_p9 = scmp.lt.u32.totalorder %s1113_s16, %s1291_s0 }
  0x42   : > { %p784_p5 = pnand %p783_p3, %p782_p0  ;;  %p788_p1 = scmp.lt.u32.totalorder %s786_s22, %s781_s7 }
  0x43   : > { %p790_p4 = scmp.lt.u32.totalorder %s781_s7, %s1113_s16 }
  0x44   : > { %p785_p7 = pneg %p784_p5  ;;  %p789_p2 = por %p788_p1, %p787_p9 }
  0x46   : > { %p791_p6 = por %p790_p4, %p789_p2 }
  0x48   : > { %p792_p8 = pnand %p791_p6, %p785_p7 }
  0x4a   : > { %795 = shalt.err (!%p792_p8)
}
  0x4b   : > { %s796_s30 = scalar_lea.vmem %s1116_s25, 128  ;;  %s968_s13 = smov [#allocation3]  }
  0x4c   : > { %p797_p11 = scmp.ne.s32.totalorder %s1116_s25, %s796_s30  ;;  %s801_s10 = sshll.u32 %s968_s13, 4  ;;  %s802_s10 = int_to_ptr.vmem [resolvable:$false] %s801_s10 }
  0x4d   : > { %s803_s12 = scalar_lea.vmem %s802_s10, 256  ;;  %p804_p5 = scmp.lt.s32.totalorder %s1116_s25, %s802_s10 }
  0x4e   : > { %p799_p12 = pnand %p797_p11, %p783_p3  ;;  %p805_p9 = scmp.lt.s32.totalorder %s803_s12, %s796_s30 }
  0x50   : > { %p800_p0 = pneg %p799_p12  ;;  %p806_p1 = por %p805_p9, %p804_p5 }
  0x52   : > { %p807_p2 = pnand %p806_p1, %p800_p0 }
  0x54   : > { %810 = shalt.err (!%p807_p2)
}
  0x55   : > { %681 = dma.hbm_to_vmem [thread:$0]  (!%p1120_p13), %s1113_s16, 128, %s1116_s25, %s238_s2  }
  0x56   : > { %s259_s22 = scalar_lea.vmem [#allocation6], %s1104_s11  ;;  %s256_s9 = scalar_lea.sflag [#allocation7], %s255_s15 }
  0x57   : > { %s266_s7 = sshll.u32 %s259_s22, 4  ;;  %s811_s17 = scalar_lea.hbm %s1127_s14, 128  ;;  %s267_s7 = int_to_ptr.vmem [resolvable:$true] %s266_s7 }
  0x58   : > { %p812_p7 = scmp.ne.s32.totalorder %s1127_s14, %s811_s17  ;;  %s816_s13 = scalar_lea.hbm %s1292_s1, 256 }
  0x59   : > { %p817_p8 = scmp.lt.u32.totalorder %s1127_s14, %s1292_s1  ;;  %p818_p11 = scmp.lt.u32.totalorder %s816_s13, %s811_s17 }
  0x5a   : > { %p814_p4 = pnand %p812_p7, %p783_p3  ;;  %p820_p0 = scmp.lt.u32.totalorder %s811_s17, %s1127_s14 }
  0x5b   : > { %p819_p12 = por %p818_p11, %p817_p8 }
  0x5c   : > { %p815_p6 = pneg %p814_p4 }
  0x5d   : > { %p821_p5 = por %p820_p0, %p819_p12 }
  0x5f   : > { %p822_p9 = pnand %p821_p5, %p815_p6 }
  0x61   : > { %825 = shalt.err (!%p822_p9)
}
  0x62   : > { %s826_s2 = scalar_lea.vmem %s267_s7, 128  ;;  %s969_s11 = smov [#allocation6]  }
  0x63   : > { %p827_p1 = scmp.ne.s32.totalorder %s267_s7, %s826_s2  ;;  %s831_s16 = sshll.u32 %s969_s11, 4  ;;  %s832_s16 = int_to_ptr.vmem [resolvable:$false] %s831_s16 }
  0x64   : > { %s833_s25 = scalar_lea.vmem %s832_s16, 256  ;;  %p834_p4 = scmp.lt.s32.totalorder %s267_s7, %s832_s16 }
  0x65   : > { %p829_p2 = pnand %p827_p1, %p783_p3  ;;  %p835_p10 = scmp.lt.s32.totalorder %s833_s25, %s826_s2 }
  0x67   : > { %p830_p7 = pneg %p829_p2  ;;  %p836_p8 = por %p835_p10, %p834_p4 }
  0x69   : > { %p837_p11 = pnand %p836_p8, %p830_p7 }
  0x6b   : > { %840 = shalt.err (!%p837_p11)
}
  0x6c   : > { %684 = dma.hbm_to_vmem [thread:$0]  (!%p1120_p13), %s1127_s14, 128, %s267_s7, %s256_s9  }
  0x6d   : > { %p1316_p6 = scmp.ne.s32.totalorder %s1307_s28, 0 }
  0x6e   : > { %s1180_s15 = sand.u32 (!%p1316_p6), 1, %s947_s19   ;;  %p1317_p10 = scmp.ne.s32.totalorder (!%p1316_p6), %s1305_s26, 0 }
  0x6f   : > { %275 = sbr.rel (%p1316_p6) target bundleno = 532 (0x214), region = 36  ;;  %s1183_s22 = sshll.u32 (!%p1316_p6), %s1180_s15, 3 }
  0x70   : > { %s278_s17 = scalar_lea.sflag (!%p1316_p6), [#allocation4], %s1180_s15  ;;  %s281_s8 = scalar_lea.vmem (!%p1316_p6), [#allocation3], %s1183_s22 }
  0x76   : > { %922 = dma.done.wait (%p1317_p10), %s278_s17, 128  }
  0x77   : > { %924 = vsyncadd (%p1317_p10), %s278_s17, 4294967168  ;;  %s286_s28 = sand.u32 1, %s1035_s24   ;;  %s290_s14 = scalar_lea.vmem [#allocation6], %s1183_s22 }
  0x78   : > { %s287_s29 = scalar_lea.sflag [#allocation7], %s286_s28 }
  0x79   : > { %926 = dma.done.wait (%p1317_p10), %s287_s29, 128  }
  0x7a   : > { %928 = vsyncadd (%p1317_p10), %s287_s29, 4294967168  ;;  %p1318_p13 = scmp.eq.s32.totalorder %s1035_s24, 0 }
  0x7c   : > { %930 = dma.done.wait (%p1318_p13), [#allocation7], 256   ;;  %p1319_p3 = pmov %p1318_p13 }
  0x7d   : > { %v342_v0 = vld [vmem:[%s281_s8] sm:$0xff]  ;;  %v343_v1 = vld [vmem:[%s290_s14] sm:$0xff]  ;;  %vm345_vm0 = vcmask 261120   ;;  %v970_v7 = vmov 0.0   ;;  %vm971_vm1 = vmmov 0   ;;  %vm364_vm2 = vcmask 257024  }
  0x7e   : > { %932 = vsyncadd (%p1319_p3), [#allocation7], 4294967040  ;;  %v344_v2 = vadd.f32 %v343_v1, %v342_v0  ;;  %v749_v6 = vld [vmem:[#allocation8] sm:$0xff]   ;;  %654 = vmatprep.subr.bf16.mxu0 %v970_v7  ;;  %v750_v8 = vld [vmem:[#allocation8 + $0x8] sm:$0xff]   ;;  %658 = vmatprep.mubr.msk.bf16.mxu0 %vm971_vm1, %v970_v7  ;;  %s647_s24 = sshll.u32 %s955_s21, 7  ;;  %s333_s26 = scalar_lea.vmem [#allocation10], %s1183_s22 }
  0x7f   : > { %655 = vmatpush3.bf16.msra.mxu0 %v749_v6  ;;  %s1212_s30 = scalar_lea.hbm %s1296_s5, %s647_s24  ;;  %s468_s13 = sshll.u32 %s333_s26, 4  ;;  %s469_s13 = int_to_ptr.vmem [resolvable:$true] %s468_s13 }
  0x80   : > { %v347_v3 = vsel %vm345_vm0, %v344_v2, 0.0  ;;  %v352_v4 = vmul.f32 %v344_v2, %v344_v2  ;;  %656 = vmatprep.subr.bf16.mxu0 %v970_v7  ;;  %346 = vst.msk [vmem:[%s333_s26] sm:$0xff] %vm345_vm0, %v344_v2  ;;  %s441_s10 = scalar_lea.sflag [#allocation11], %s1180_s15  ;;  %s841_s12 = scalar_lea.vmem %s469_s13, 128 }
  0x81   : > { %348 = vadd.xlane.f32.xlu0 %v347_v3  ;;  %p842_p12 = scmp.ne.s32.totalorder %s469_s13, %s841_s12  ;;  %p1320_p0 = scmp.ne.s32.totalorder %s1313_s6, 0 }
  0x82   : > { %v353_v5 = vsel %vm345_vm0, %v352_v4, 0.0  ;;  %s972_s2 = smov [#allocation10]  }
  0x83   : > { %657 = vmatpush3.bf16.msra.mxu0 %v750_v8  ;;  %p843_p5 = pnand %p842_p12, %p1320_p0  ;;  %s845_s11 = sshll.u32 %s972_s2, 4  ;;  %s846_s11 = int_to_ptr.vmem [resolvable:$false] %s845_s11 }
  0x84   : > { %s847_s16 = scalar_lea.vmem %s846_s11, 256  ;;  %p848_p1 = scmp.lt.s32.totalorder %s469_s13, %s846_s11 }
  0x85   : > { %354 = vadd.xlane.f32.xlu0 %v353_v5  ;;  %p844_p9 = pneg %p843_p5  ;;  %p849_p2 = scmp.lt.s32.totalorder %s847_s16, %s841_s12 }
  0x87   : > { %p850_p7 = por %p849_p2, %p848_p1 }
  0x89   : > { %p851_p4 = pnand %p850_p7, %p844_p9 }
 0x10e   : > { %v349_v9 = vpop.xlane.xlu0 %348 }
 0x10f   : > { %v351_v10 = vmul.f32 0.03125, %v349_v9 }
 0x111   : > { %v357_v12 = vmul.f32 %v351_v10, %v351_v10  ;;  %v361_v16 = vsub.f32 %v344_v2, %v351_v10 }
 0x112   : > { %v355_v11 = vpop.xlane.xlu0 %354 }
 0x113   : > { %v356_v13 = vmul.f32 0.03125, %v355_v11 }
 0x115   : > { %v358_v14 = vsub.f32 %v356_v13, %v357_v12 }
 0x117   : > { %v359_v15 = vadd.f32 1e-05, %v358_v14 }
 0x119   : > { %751 = vrsqrt.f32 %v359_v15 }
 0x123   : > { %v752_v17 = vpop.eup %751 }
 0x124   : > { %v362_v18 = vmul.f32 %v752_v17, %v361_v16 }
 0x126   : > { %v363_v19 = vpack.c.bf16 %v362_v18, %v362_v18 }
 0x128   : > { %365 = vst.msk [vmem:[#allocation2] sm:$0xf] %vm364_vm2, %v363_v19 }
 0x12f   : > { %v366_v20 = vld [vmem:[#allocation2] sm:$0xf] }
 0x130   : > { %659 = vmatmul.mubr.msk.bf16.vlgmr.msra.gmra.mrb[0].mxu0 %vm345_vm0, %v366_v20 }
 0x131   : > { %854 = shalt.err (!%p851_p4)
}
 0x132   : > { %s855_s25 = scalar_lea.hbm %s1212_s30, 128  ;;  %s859_s28 = scalar_lea.hbm %s1296_s5, 256 }
 0x133   : > { %p856_p8 = scmp.ne.s32.totalorder %s1212_s30, %s855_s25  ;;  %p860_p10 = scmp.lt.u32.totalorder %s1212_s30, %s1296_s5 }
 0x134   : > { %p861_p13 = scmp.lt.u32.totalorder %s859_s28, %s855_s25  ;;  %p863_p12 = scmp.lt.u32.totalorder %s855_s25, %s1212_s30 }
 0x135   : > { %p857_p11 = pnand %p856_p8, %p1320_p0 }
 0x136   : > { %p862_p3 = por %p861_p13, %p860_p10 }
 0x137   : > { %p858_p6 = pneg %p857_p11 }
 0x138   : > { %p864_p5 = por %p863_p12, %p862_p3 }
 0x13a   : > { %p865_p9 = pnand %p864_p5, %p858_p6 }
 0x13c   : > { %868 = shalt.err (!%p865_p9)
}
 0x13d   : > { %671 = dma.vmem_to_hbm [thread:$0]  (%p1320_p0), %s469_s13, 128, %s1212_s30, %s441_s10   ;;  %v641_v21 = vld [vmem:[%s1294_s3] ss:$0 sm:$0xff] }
 0x13e   : > { %s326_s9 = scalar_lea.vmem [#allocation9], %s1183_s22  ;;  %s1241_s16 = scalar_lea.hbm %s1295_s4, %s647_s24 }
 0x13f   : > { %s455_s12 = sshll.u32 %s326_s9, 4  ;;  %s436_s22 = scalar_lea.sflag [#allocation5], %s1180_s15  ;;  %s1243_s12 = int_to_ptr.vmem [resolvable:$true] %s455_s12 }
 0x140   : > { %s869_s30 = scalar_lea.vmem %s1243_s12, 128  ;;  %s973_s21 = smov [#allocation9]  }
 0x141   : > { %p870_p1 = scmp.ne.s32.totalorder %s1243_s12, %s869_s30  ;;  %s873_s13 = sshll.u32 %s973_s21, 4  ;;  %s874_s13 = int_to_ptr.vmem [resolvable:$false] %s873_s13 }
 0x142   : > { %s875_s24 = scalar_lea.vmem %s874_s13, 256  ;;  %p876_p4 = scmp.lt.s32.totalorder %s1243_s12, %s874_s13 }
 0x143   : > { %p871_p2 = pnand %p870_p1, %p1320_p0  ;;  %p877_p8 = scmp.lt.s32.totalorder %s875_s24, %s869_s30 }
 0x145   : > { %p872_p7 = pneg %p871_p2  ;;  %p878_p11 = por %p877_p8, %p876_p4 }
 0x147   : > { %p879_p6 = pnand %p878_p11, %p872_p7 }
 0x203   : > { %v428_v22 = vpop.f32.mrb[0].mxu0 }
 0x204   : > { %v429_v23 = vadd.f32 %v641_v21, %v428_v22  ;;  %v660_v24 = vpop.f32.mrb[1].mxu0 }
 0x205   : > { %v431_v25 = vpop.f32.mrb[2].mxu0 }
 0x206   : > { %v661_v26 = vpop.f32.mrb[3].mxu0  ;;  %434 = vst.msk [vmem:[%s326_s9] sm:$0xff] %vm345_vm0, %v429_v23 }
 0x207   : > { %882 = shalt.err (!%p879_p6)
}
 0x208   : > { %s883_s15 = scalar_lea.hbm %s1241_s16, 128  ;;  %s887_s17 = scalar_lea.hbm %s1295_s4, 256 }
 0x209   : > { %p884_p10 = scmp.ne.s32.totalorder %s1241_s16, %s883_s15  ;;  %p888_p12 = scmp.lt.u32.totalorder %s1241_s16, %s1295_s4 }
 0x20a   : > { %p889_p5 = scmp.lt.u32.totalorder %s887_s17, %s883_s15  ;;  %p891_p1 = scmp.lt.u32.totalorder %s883_s15, %s1241_s16 }
 0x20b   : > { %p885_p13 = pnand %p884_p10, %p1320_p0 }
 0x20c   : > { %p890_p9 = por %p889_p5, %p888_p12 }
 0x20d   : > { %p886_p3 = pneg %p885_p13 }
 0x20e   : > { %p892_p2 = por %p891_p1, %p890_p9 }
 0x210   : > { %p893_p7 = pnand %p892_p2, %p886_p3 }
 0x212   : > { %896 = shalt.err (!%p893_p7)
}
 0x213   : > { %670 = dma.vmem_to_hbm [thread:$0]  (%p1320_p0), %s1243_s12, 128, %s1241_s16, %s436_s22  }
 0x214 PF: > { %s480_s29 = sand.u32 1, %s943_s18   ;;  %p1321_p4 = scmp.ne.s32.totalorder %s1306_s27, 0 }
 0x215   : > { %p1322_p8 = scmp.ge.s32.totalorder %s963_s23, 2  ;;  %s481_s14 = scalar_lea.sflag [#allocation5], %s480_s29 }
 0x217   : > { %p686_p11 = pnand %p1322_p8, %p1321_p4 }
 0x219   : > { %934 = dma.done.wait (!%p686_p11), %s481_s14, 128  }
 0x21a   : > { %936 = vsyncadd (!%p686_p11), %s481_s14, 4294967168  ;;  %s490_s26 = scalar_lea.sflag [#allocation11], %s480_s29 }
 0x21b   : > { %938 = dma.done.wait (!%p686_p11), %s490_s26, 128  }
 0x21c   : > { %940 = vsyncadd (!%p686_p11), %s490_s26, 4294967168  ;;  %s28_s23 = sadd.s32 1, %s963_s23   ;;  %s1323_s6 = sld [smem:[#allocation19_spill]] }
 0x21d   : > { %p25_p6 = scmp.ge.s32.totalorder %s28_s23, 4   ;;  %s1324_s21 = sld [smem:[#allocation17_spill]] }
 0x21e   : > { %s1325_s22 = sld [smem:[#allocation18_spill]]  ;;  %s1326_s18 = smov %s947_s19 }
 0x21f   : > { %s1327_s19 = smov %s951_s20  ;;  %27 = sbr.rel (!%p25_p6) target bundleno = 12 (0xc), region = 123 }
 0x222   : > { %s1328_s20 = smov %s1323_s6 }
 0x226   :  { %495 = vsyncpa [#allocation4], 1 }
 0x227   :  { %497 = vsyncpa [#allocation4 + $0x1], 1 }
 0x228   :  { %498 = vsyncpa [#allocation7], 1 }
 0x229   :  { %500 = vsyncpa [#allocation7 + $0x1], 1 }
 0x22a   :  { %501 = vsyncpa [#allocation5], 1 }
 0x22b   :  { %503 = vsyncpa [#allocation5 + $0x1], 1 }
 0x22c   :  { %504 = vsyncpa [#allocation11], 1 }
 0x22d   :  { %506 = vsyncpa [#allocation11 + $0x1], 1 }

</bundles_post_ra>
